<compile_context>
chip_gen: v7x
topology: tpu7x:2x2x1
jax: 0.10.0
libtpu: 0.0.40
codegen_flags: <defaults>
</compile_context>

<pallas_src>
import functools
import math

import jax
import jax.numpy as jnp
from jax import lax
from jax.experimental import pallas as pl
from jax.experimental.pallas import tpu as pltpu


# ~2 MiB (f32) per block buffer; with double-buffered x / out / pe this stays
# well inside the smallest scoped-VMEM budget across v5e / v6e / v7x.
_TARGET_BLOCK_ELEMS = 512 * 1024


def _largest_aligned_divisor(n: int, align: int, cap: int):
    """Largest d <= cap with n % d == 0 and d % align == 0, else None."""
    d = (min(cap, n) // align) * align
    while d >= align:
        if n % d == 0:
            return d
        d -= align
    return None


def _pick_lane_tile(n: int) -> int:
    if n <= _TARGET_BLOCK_ELEMS:
        return n                                   # full dim: always layout-legal
    d = _largest_aligned_divisor(n, 128, _TARGET_BLOCK_ELEMS)
    return d if d is not None else n


def _pick_row_tile(b: int, lane_tile: int) -> int:
    rows_target = max(1, _TARGET_BLOCK_ELEMS // lane_tile)
    if b <= max(8, rows_target):
        return b                                   # full batch dim: always legal
    d = _largest_aligned_divisor(b, 8, rows_target)
    return d if d is not None else b


def _pe_kernel(seed_ref, x_ref, pe_ref, o_ref, *,
               p: float, training: bool, n_flat: int, keep_threshold: int):
    # x_ref block: (TB, TC); pe_ref block: (1, TC) -> broadcast over batch rows.
    y = x_ref[...] + pe_ref[...]

    if training and p > 0.0:
        tb, tc = o_ref.shape
        # Global flat element index for every lane of this block.
        row = pl.program_id(0) * tb + lax.broadcasted_iota(jnp.int32, (tb, tc), 0)
        col = pl.program_id(1) * tc + lax.broadcasted_iota(jnp.int32, (tb, tc), 1)
        ctr = (row * n_flat + col).astype(jnp.uint32)
        # Counter-based hash (lowbias32) mixed with the runtime seed, then a
        # single unsigned compare -> inverted dropout with keep prob (1 - p).
        h = ctr ^ seed_ref[0].astype(jnp.uint32)
        h = h ^ (h >> 16)
        h = h * jnp.uint32(0x7FEB352D)
        h = h ^ (h >> 15)
        h = h * jnp.uint32(0x846CA68B)
        h = h ^ (h >> 16)
        keep = h >= jnp.uint32(keep_threshold)
        scale = jnp.asarray(1.0 / (1.0 - p), y.dtype)
        y = jnp.where(keep, y * scale, jnp.zeros_like(y))

    o_ref[...] = y.astype(o_ref.dtype)


def make_positional_encoding_table(d_model: int, max_len: int = 5000) -> jnp.ndarray:
    """Build the (max_len, d_model) sinusoidal PE buffer (same as PyTorch __init__)."""
    assert d_model % 2 == 0, "d_model must be even (as in the reference module)"
    position = jnp.arange(max_len, dtype=jnp.float32)[:, None]                 # (L, 1)
    div_term = jnp.exp(
        jnp.arange(0, d_model, 2, dtype=jnp.float32) * (-math.log(10000.0) / d_model)
    )                                                                          # (D/2,)
    angles = position * div_term                                               # (L, D/2)
    # interleave: even cols = sin, odd cols = cos
    pe = jnp.stack([jnp.sin(angles), jnp.cos(angles)], axis=-1).reshape(max_len, d_model)
    return pe.astype(jnp.float32)


def positional_encoding_forward(
    x: jnp.ndarray,
    pe: jnp.ndarray,
    *,
    p: float = 0.1,
    training: bool = False,
    seed: int = 0,
) -> jnp.ndarray:
    """x: (B, S, D); pe: (max_len, D). Returns dropout(x + pe[:S])."""
    B, S, D = x.shape
    N = S * D
    dsize = x.dtype.itemsize

    # Lane-dense 2-D view (free reshape on a contiguous array): the PE add is
    # identical after flattening because pe repeats exactly once per batch row.
    x2 = x.reshape(B, N)
    pe2 = pe[:S].astype(x.dtype).reshape(1, N)
    seed_arr = jnp.asarray([seed], dtype=jnp.int32)

    tc = _pick_lane_tile(N)
    tb = _pick_row_tile(B, tc)
    grid = (B // tb, N // tc)

    keep_threshold = min(int(round(float(p) * 4294967296.0)), 4294967295)
    kernel = functools.partial(
        _pe_kernel,
        p=float(p),
        training=bool(training),
        n_flat=N,
        keep_threshold=keep_threshold,
    )

    out2 = pl.pallas_call(
        kernel,
        out_shape=jax.ShapeDtypeStruct((B, N), x.dtype),
        grid_spec=pltpu.PrefetchScalarGridSpec(
            num_scalar_prefetch=0,
            grid=grid,
            in_specs=[
                pl.BlockSpec(memory_space=pltpu.MemorySpace.SMEM),     # seed scalar
                pl.BlockSpec((tb, tc), lambda i, j: (i, j)),           # x tile
                pl.BlockSpec((1, tc), lambda i, j: (0, j)),            # pe tile (shared)
            ],
            out_specs=pl.BlockSpec((tb, tc), lambda i, j: (i, j)),
        ),
        compiler_params=pltpu.CompilerParams(
            dimension_semantics=("parallel", "parallel"),
            vmem_limit_bytes=32 * 1024 * 1024,
        ),
        cost_estimate=pl.CostEstimate(
            flops=B * N,
            transcendentals=0,
            bytes_accessed=2 * B * N * dsize + N * dsize,
        ),
    )(seed_arr, x2, pe2)

    return out2.reshape(B, S, D)


if __name__ == "__main__":
    # small shapes: batch=2, seq=8, d_model=32
    B, S, D = 2, 8, 32
    max_len = 64
    dropout_p = 0.1

    key = jax.random.PRNGKey(0)
    x = jax.random.normal(key, (B, S, D), dtype=jnp.float32)
    pe = make_positional_encoding_table(D, max_len)

    # Eval-mode forward (dropout is identity, like module.eval()).
    out = positional_encoding_forward(x, pe, p=dropout_p, training=False)
    out = jax.block_until_ready(out)

    ref = x + pe[:S][None, :, :]
    assert out.shape == (B, S, D)
    assert jnp.allclose(out, ref, atol=1e-6, rtol=1e-6), "eval-mode mismatch vs reference"

    # Training-mode forward: every element must be 0 or (x + pe) / (1 - p).
    out_train = positional_encoding_forward(x, pe, p=dropout_p, training=True, seed=123)
    out_train = jax.block_until_ready(out_train)
    assert out_train.shape == (B, S, D)
    scaled = ref * (1.0 / (1.0 - dropout_p))
    ok = jnp.isclose(out_train, 0.0, atol=1e-6) | jnp.isclose(
        out_train, scaled, atol=1e-5, rtol=1e-5
    )
    assert bool(jnp.all(ok)), "training-mode values not in {0, (x+pe)/(1-p)}"

    print("KERNEL_OK")
</pallas_src>

<mosaic_0001>
module attributes {stable_mosaic.version = 11 : i64} {
  func.func @_pe_kernel(%arg0: i32, %arg1: i32, %arg2: memref<1xi32, #tpu.memory_space<smem>>, %arg3: memref<2x256xf32, #tpu.memory_space<vmem>>, %arg4: memref<1x256xf32, #tpu.memory_space<vmem>>, %arg5: memref<2x256xf32, #tpu.memory_space<vmem>>) attributes {dimension_semantics = [#tpu.dimension_semantics<parallel>, #tpu.dimension_semantics<parallel>], iteration_bounds = array<i64: 1, 1>, scalar_prefetch = 0 : i64, scratch_operands = 0 : i64, tpu.core_type = #tpu.core_type<tc>, window_params = [{transform_indices = @transform_0, window_bounds = array<i64: 1>}, {transform_indices = @transform_1, window_bounds = array<i64: 2, 256>}, {transform_indices = @transform_2, window_bounds = array<i64: 1, 256>}, {transform_indices = @transform_3, window_bounds = array<i64: 2, 256>}]} {
    %c0 = arith.constant 0 : index
    %c0_0 = arith.constant 0 : index
    %0 = vector.load %arg3[%c0, %c0_0] : memref<2x256xf32, #tpu.memory_space<vmem>>, vector<2x256xf32>
    %c0_1 = arith.constant 0 : index
    %c0_2 = arith.constant 0 : index
    %1 = vector.load %arg4[%c0_1, %c0_2] : memref<1x256xf32, #tpu.memory_space<vmem>>, vector<1x256xf32>
    %2 = vector.broadcast %1 : vector<1x256xf32> to vector<2x256xf32>
    %3 = arith.addf %0, %2 : vector<2x256xf32>
    %c0_3 = arith.constant 0 : index
    %c0_4 = arith.constant 0 : index
    %4 = vector.load %arg5[%c0_3, %c0_4] : memref<2x256xf32, #tpu.memory_space<vmem>>, vector<2x256xf32>
    tpu.vector_store %arg5[%c0_3, %c0_4], %3 {strides = array<i32>} : memref<2x256xf32, #tpu.memory_space<vmem>>, vector<2x256xf32>,
    return
  }
  func.func @transform_0(%arg0: i32, %arg1: i32) -> i32 {
    %c0_i32 = arith.constant 0 : i32
    %c0_i32_0 = arith.constant 0 : i32
    return %c0_i32 : i32
  }
  func.func @transform_1(%arg0: i32, %arg1: i32) -> (i32, i32) {
    %c0_i32 = arith.constant 0 : i32
    return %arg0, %arg1 : i32, i32
  }
  func.func @transform_2(%arg0: i32, %arg1: i32) -> (i32, i32) {
    %c0_i32 = arith.constant 0 : i32
    %c0_i32_0 = arith.constant 0 : i32
    return %c0_i32, %arg1 : i32, i32
  }
  func.func @transform_3(%arg0: i32, %arg1: i32) -> (i32, i32) {
    %c0_i32 = arith.constant 0 : i32
    return %arg0, %arg1 : i32, i32
  }
}

</mosaic_0001>

<bundles_post_ra>
// kernel: tpu_custom_call.1
= control target key start
LH: loop header
LB: loop body
LE: loop exit
PB: predicated region body
PF: predicated region fallthrough
CT: control target
= control target key end

     0   :  { %9 = vsyncpa [#allocation4], 0  ;;  %s166_s0 = inlined_call_operand.<no memory space> [shape: s32[1], index: 0, kind: input, shape index: {}]   ;;  %s167_s1 = inlined_call_operand.hbm [shape: f32[2,256], index: 1, kind: input, shape index: {}]   ;;  %s168_s2 = inlined_call_operand.vmem [shape: f32[1,256], index: 2, kind: input, shape index: {}]   ;;  %s169_s3 = inlined_call_operand.hbm [shape: f32[2,256], index: 3, kind: output, shape index: {}]  }
   0x1   :  { %10 = vsyncpa [#allocation5], 0  ;;  %s116_s12 = smov [#allocation3]   ;;  %s68_s16 = scalar_lea.hbm %s167_s1, 64 }
   0x2   :  { %s19_s13 = sshll.u32 %s116_s12, 4  ;;  %p69_p0 = scmp.ne.s32.totalorder %s167_s1, %s68_s16  ;;  %s20_s13 = int_to_ptr.vmem [resolvable:$true] %s19_s13 }
   0x3   :  { %p72_p1 = scmp.lt.u32.totalorder %s68_s16, %s167_s1 }
   0x5   :  { %p74_p2 = pnand %p72_p1, %p69_p0 }
   0x7   :  { %77 = shalt.err (!%p74_p2)
}
   0x8   :  { %s78_s20 = scalar_lea.vmem %s20_s13, 64  ;;  %p83_p4 = scmp.lt.s32.totalorder %s20_s13, %s20_s13 }
   0x9   :  { %p79_p3 = scmp.ne.s32.totalorder %s20_s13, %s78_s20  ;;  %p84_p5 = scmp.lt.s32.totalorder %s78_s20, %s78_s20 }
   0xb   :  { %p85_p6 = por %p84_p5, %p83_p4 }
   0xd   :  { %p86_p7 = pnand %p85_p6, %p79_p3 }
   0xf   :  { %89 = shalt.err (!%p86_p7)
}
  0x10   :  { %22 = dma.hbm_to_vmem [thread:$0]  %s167_s1, 64, %s20_s13, [#allocation4]  }
  0x11   :  { %112 = dma.done.wait [#allocation4], 64  }
  0x12   :  { %113 = vsyncadd [#allocation4], 4294967232  ;;  %v31_v0 = vlaneseq  ;;  %v117_v1 = vmov 1983009808   ;;  %v29_v7 = vld [vmem:[%s168_s2] sm:$0x3] }
  0x13   :  { %v41_v2 = vunpack.c.l.s4 %v117_v1  ;;  %v28_v12 = vld [vmem:[#allocation3] sm:$0xf]  ;;  %s118_s25 = smov [#allocation6]  }
  0x14   :  { %v32_v3 = vshrl.u32 %v31_v0, 7  ;;  %s56_s1 = sshll.u32 %s118_s25, 4  ;;  %s57_s1 = int_to_ptr.vmem [resolvable:$true] %s56_s1 }
  0x15   :  { %v42_v6 = vunpack.c.0.s8 %v41_v2  ;;  %s90_s26 = scalar_lea.vmem %s57_s1, 64  ;;  %p95_p9 = scmp.lt.s32.totalorder %s57_s1, %s57_s1 }
  0x16   :  { %v33_v4 = vsub.s32 0, %v32_v3  ;;  %v37_v5 = vsub.s32 1, %v32_v3  ;;  %p91_p8 = scmp.ne.s32.totalorder %s57_s1, %s90_s26  ;;  %p96_p10 = scmp.lt.s32.totalorder %s90_s26, %s90_s26 }
  0x17   :  { %v45_v10 = vsub.s32 %v42_v6, %v32_v3 }
  0x18   :  { %v34_v8 = vrot.slane %v29_v7, %v33_v4  ;;  %v38_v9 = vrot.slane %v29_v7, %v37_v5  ;;  %p97_p11 = por %p96_p10, %p95_p9 }
  0x1a   :  { %v39_v11 = vcombine.low %v34_v8, %v38_v9  ;;  %p98_p12 = pnand %p97_p11, %p91_p8 }
  0x1c   :  { %v46_v13 = vrot.slane %v39_v11, %v45_v10 }
  0x1e   :  { %v48_v14 = vadd.f32 %v46_v13, %v28_v12 }
  0x20   :  { %49 = vst [vmem:[#allocation6] sm:$0xf] %v48_v14 }
  0x21   :  { %101 = shalt.err (!%p98_p12)
}
  0x22   :  { %s102_s28 = scalar_lea.hbm %s169_s3, 64 }
  0x23   :  { %p103_p13 = scmp.ne.s32.totalorder %s169_s3, %s102_s28  ;;  %p106_p0 = scmp.lt.u32.totalorder %s102_s28, %s169_s3 }
  0x25   :  { %p108_p1 = pnand %p106_p0, %p103_p13 }
  0x27   :  { %111 = shalt.err (!%p108_p1)
}
  0x28   :  { %59 = dma.vmem_to_hbm [thread:$0]  %s57_s1, 64, %s169_s3, [#allocation5]  }
  0x29   :  { %114 = dma.done.wait [#allocation5], 64  }
  0x2a   :  { %115 = vsyncadd [#allocation5], 4294967232 }
  0x2b   :  { %63 = vsyncpa [#allocation4], 1 }
  0x2c   :  { %64 = vsyncpa [#allocation5], 1 }

</bundles_post_ra>
